<compile_context>
chip_gen: v7x
topology: tpu7x:2x2x1
jax: 0.10.0
libtpu: 0.0.40
codegen_flags: <defaults>
</compile_context>

<pallas_src>
import functools

import jax
import jax.numpy as jnp
from jax.experimental import pallas as pl
from jax.experimental.pallas import tpu as pltpu


def _round_up(x, m):
    return -(-x // m) * m


def _seg_loss_kernel(x_ref, t_ref, w_ref, out_ref, acc_ref, *,
                     total_elems, dice_eps, dice_weight):
    i = pl.program_id(0)
    j = pl.program_id(1)

    @pl.when(jnp.logical_and(i == 0, j == 0))
    def _():
        acc_ref[0] = jnp.float32(0.0)
        acc_ref[1] = jnp.float32(0.0)
        acc_ref[2] = jnp.float32(0.0)

    x = x_ref[...].astype(jnp.float32)
    t = t_ref[...].astype(jnp.float32)
    w = w_ref[...]                       # (row_b, 1) per-plane (per-class) weight

    # One exp per element feeds both the stable BCE and the sigmoid (3 EUP
    # ops/elem total: exp, log, reciprocal).
    e = jnp.exp(-jnp.abs(x))
    bce = jnp.maximum(x, 0.0) - x * t + jnp.log(1.0 + e)
    den = 1.0 + e
    y = pl.reciprocal(den, approx=True)
    r = y * (2.0 - den * y)              # one Newton-Raphson step -> ~f32 exact
    sig = jnp.where(x >= 0.0, r, e * r)

    # Per-block reduction straight into SMEM scalar accumulators (no full-tile
    # VMEM RMW).  Padded regions contribute exactly 0 (x padded with -1e4,
    # t and w padded with 0), so no masking is needed here.
    acc_ref[0] += jnp.sum(bce * w)
    acc_ref[1] += jnp.sum(sig * t)
    acc_ref[2] += jnp.sum(sig) + jnp.sum(t)

    @pl.when(jnp.logical_and(i == pl.num_programs(0) - 1,
                             j == pl.num_programs(1) - 1))
    def _():
        ce = acc_ref[0] / total_elems
        d = (2.0 * acc_ref[1] + dice_eps) / (acc_ref[2] + dice_eps)
        out_ref[0] = ce
        out_ref[1] = d
        out_ref[2] = ce - dice_weight * d


def _choose_tiling(rows, cols, *, sub=8, target_bytes=4 << 20):
    """Pick a lane-dense (row_block, col_block) tile of roughly target_bytes.

    Padding-aware: prefers the largest col/row block whose round-up padding is
    <= 2% (a 128-wide column block always pads by zero beyond 128-alignment).
    Returns (rows_padded, cols_padded, row_block, col_block).
    """
    cols_p = _round_up(cols, 128)
    col_cap = max(128, min(cols_p, (target_bytes // (sub * 4)) // 128 * 128))
    col_b = 128
    for c in range(col_cap, 127, -128):
        if (_round_up(cols_p, c) - cols_p) * 50 <= cols_p:   # <= 2% extra pad
            col_b = c
            break
    cols_pp = _round_up(cols_p, col_b)

    rows_p = _round_up(rows, sub)
    row_cap = max(sub, (target_bytes // (col_b * 4)) // sub * sub)
    if rows_p <= row_cap:
        row_b = rows_p
    else:
        row_b = sub
        for rc in range(row_cap, sub - 1, -sub):
            if (_round_up(rows_p, rc) - rows_p) * 50 <= rows_p:
                row_b = rc
                break
    rows_pp = _round_up(rows_p, row_b)
    return rows_pp, cols_pp, row_b, col_b


def segmentation_loss(inputs, targets, *, dice_weight=1.0, dice_eps=1e-3,
                      class_weights=None):
    """Pallas implementation of SegmentationLoss.forward.

    inputs, targets: (N, C, H, W) arrays (NCHW, like PyTorch).
    Returns dict with 'ce', 'dice', 'total' float32 scalars.
    """
    N, C, H, W = inputs.shape
    R, HW = N * C, H * W

    dtype = inputs.dtype
    itemsize = jnp.dtype(dtype).itemsize
    sub = {4: 8, 2: 16, 1: 32}.get(itemsize, 8)

    Rp, Cp, row_b, col_b = _choose_tiling(R, HW, sub=sub)

    # Lane-dense 2D layout: one image plane per row, H*W along the lane axis.
    x2 = inputs.reshape(R, HW)
    t2 = targets.reshape(R, HW).astype(dtype)
    if Rp > R or Cp > HW:
        # Pad x with a large *finite* negative logit so BCE / sigmoid / sums are
        # exactly 0 in the padding (no per-element masks in the kernel).
        x2 = jnp.pad(x2, ((0, Rp - R), (0, Cp - HW)), constant_values=-1e4)
        t2 = jnp.pad(t2, ((0, Rp - R), (0, Cp - HW)))

    # Per-row (per-plane) weight column vector; row r has class r % C.
    if class_weights is None:
        w_row = jnp.ones((R,), jnp.float32)
    else:
        cw = jnp.asarray(class_weights, jnp.float32).reshape(C)
        w_row = jnp.tile(cw, N)
    if Rp > R:
        w_row = jnp.pad(w_row, (0, Rp - R))
    w_row = w_row.reshape(Rp, 1)

    kernel = functools.partial(
        _seg_loss_kernel,
        total_elems=float(N * C * H * W),
        dice_eps=float(dice_eps),
        dice_weight=float(dice_weight),
    )

    grid = (Rp // row_b, Cp // col_b)
    out = pl.pallas_call(
        kernel,
        out_shape=jax.ShapeDtypeStruct((3,), jnp.float32),
        grid_spec=pltpu.PrefetchScalarGridSpec(
            num_scalar_prefetch=0,
            grid=grid,
            in_specs=[
                pl.BlockSpec((row_b, col_b), lambda i, j: (i, j)),
                pl.BlockSpec((row_b, col_b), lambda i, j: (i, j)),
                pl.BlockSpec((row_b, 1), lambda i, j: (i, 0)),
            ],
            out_specs=pl.BlockSpec(memory_space=pltpu.MemorySpace.SMEM),
            scratch_shapes=[pltpu.SMEM((3,), jnp.float32)],
        ),
        compiler_params=pltpu.CompilerParams(
            dimension_semantics=("arbitrary", "arbitrary"),
            vmem_limit_bytes=40 * 1024 * 1024),
    )(x2, t2, w_row)

    return {"ce": out[0], "dice": out[1], "total": out[2]}


def _reference(inputs, targets, *, dice_weight=1.0, dice_eps=1e-3,
               class_weights=None):
    x = inputs.astype(jnp.float32)
    t = targets.astype(jnp.float32)
    bce = jnp.maximum(x, 0.0) - x * t + jnp.log(1.0 + jnp.exp(-jnp.abs(x)))
    if class_weights is not None:
        cw = jnp.asarray(class_weights, jnp.float32).reshape(1, -1, 1, 1)
        bce = bce * cw
    ce = bce.mean()
    s = jax.nn.sigmoid(x).ravel()
    tt = t.ravel()
    inter = (s * tt).sum()
    d = (2.0 * inter + dice_eps) / (s.sum() + tt.sum() + dice_eps)
    return {"ce": ce, "dice": d, "total": ce - dice_weight * d}


if __name__ == "__main__":
    key = jax.random.PRNGKey(0)
    k1, k2 = jax.random.split(key)

    # Case 1: default module config (dice_weight=1.0, dice_eps=1e-3, no weights)
    N, C, H, W = 2, 4, 16, 16
    inputs = jax.random.normal(k1, (N, C, H, W), dtype=jnp.float32)
    targets = (jax.random.uniform(k2, (N, C, H, W)) > 0.5).astype(jnp.float32)

    got = segmentation_loss(inputs, targets, dice_weight=1.0, dice_eps=1e-3)
    got = jax.tree_util.tree_map(jax.block_until_ready, got)
    ref = _reference(inputs, targets, dice_weight=1.0, dice_eps=1e-3)
    for k in ("ce", "dice", "total"):
        assert jnp.allclose(got[k], ref[k], atol=1e-5, rtol=1e-5), (k, got[k], ref[k])

    # Case 2: per-class weights, non-default dice_weight
    cw = jnp.array([1.0, 2.0, 0.5, 1.5], jnp.float32)
    got = segmentation_loss(inputs, targets, dice_weight=0.7, dice_eps=1e-3,
                            class_weights=cw)
    got = jax.tree_util.tree_map(jax.block_until_ready, got)
    ref = _reference(inputs, targets, dice_weight=0.7, dice_eps=1e-3,
                     class_weights=cw)
    for k in ("ce", "dice", "total"):
        assert jnp.allclose(got[k], ref[k], atol=1e-5, rtol=1e-5), (k, got[k], ref[k])

    # Case 3: spatial size not a multiple of 128 -> exercises the -1e4 padding path
    k3, k4 = jax.random.split(k2)
    x3 = jax.random.normal(k3, (2, 4, 12, 12), dtype=jnp.float32)
    t3 = (jax.random.uniform(k4, (2, 4, 12, 12)) > 0.5).astype(jnp.float32)
    got = segmentation_loss(x3, t3, dice_weight=1.0, dice_eps=1e-3)
    got = jax.tree_util.tree_map(jax.block_until_ready, got)
    ref = _reference(x3, t3, dice_weight=1.0, dice_eps=1e-3)
    for k in ("ce", "dice", "total"):
        assert jnp.allclose(got[k], ref[k], atol=1e-5, rtol=1e-5), (k, got[k], ref[k])

    print("KERNEL_OK")
</pallas_src>

<mosaic_0001>
module attributes {stable_mosaic.version = 11 : i64} {
  func.func @_seg_loss_kernel(%arg0: i32, %arg1: i32, %arg2: memref<8x256xf32, #tpu.memory_space<vmem>>, %arg3: memref<8x256xf32, #tpu.memory_space<vmem>>, %arg4: memref<8x1xf32, #tpu.memory_space<vmem>>, %arg5: memref<3xf32, #tpu.memory_space<smem>>, %arg6: memref<3xf32, #tpu.memory_space<smem>>) attributes {dimension_semantics = [#tpu.dimension_semantics<arbitrary>, #tpu.dimension_semantics<arbitrary>], iteration_bounds = array<i64: 1, 1>, scalar_prefetch = 0 : i64, scratch_operands = 1 : i64, tpu.core_type = #tpu.core_type<tc>, window_params = [{transform_indices = @transform_0, window_bounds = array<i64: 8, 256>}, {transform_indices = @transform_1, window_bounds = array<i64: 8, 256>}, {transform_indices = @transform_2, window_bounds = array<i64: 8, 1>}, {transform_indices = @transform_3, window_bounds = array<i64: 3>}]} {
    %c0_i32 = arith.constant 0 : i32
    %0 = arith.cmpi eq, %arg0, %c0_i32 : i32
    %c0_i32_0 = arith.constant 0 : i32
    %1 = arith.cmpi eq, %arg1, %c0_i32_0 : i32
    %2 = arith.andi %0, %1 : i1
    %3 = arith.extui %2 : i1 to i32
    %c0_i32_1 = arith.constant 0 : i32
    %4 = arith.cmpi ne, %3, %c0_i32_1 : i32
    scf.if %4 {
      %cst_23 = arith.constant 0.000000e+00 : f32
      %c0_24 = arith.constant 0 : index
      %65 = memref.load %arg6[%c0_24] : memref<3xf32, #tpu.memory_space<smem>>
      memref.store %cst_23, %arg6[%c0_24] : memref<3xf32, #tpu.memory_space<smem>>
      %cst_25 = arith.constant 0.000000e+00 : f32
      %c1_26 = arith.constant 1 : index
      %66 = memref.load %arg6[%c1_26] : memref<3xf32, #tpu.memory_space<smem>>
      memref.store %cst_25, %arg6[%c1_26] : memref<3xf32, #tpu.memory_space<smem>>
      %cst_27 = arith.constant 0.000000e+00 : f32
      %c2_28 = arith.constant 2 : index
      %67 = memref.load %arg6[%c2_28] : memref<3xf32, #tpu.memory_space<smem>>
      memref.store %cst_27, %arg6[%c2_28] : memref<3xf32, #tpu.memory_space<smem>>
    } else {
    }
    %c0 = arith.constant 0 : index
    %c0_2 = arith.constant 0 : index
    %5 = vector.load %arg2[%c0, %c0_2] : memref<8x256xf32, #tpu.memory_space<vmem>>, vector<8x256xf32>
    %c0_3 = arith.constant 0 : index
    %c0_4 = arith.constant 0 : index
    %6 = vector.load %arg3[%c0_3, %c0_4] : memref<8x256xf32, #tpu.memory_space<vmem>>, vector<8x256xf32>
    %c0_5 = arith.constant 0 : index
    %c0_6 = arith.constant 0 : index
    %7 = vector.load %arg4[%c0_5, %c0_6] : memref<8x1xf32, #tpu.memory_space<vmem>>, vector<8x1xf32>
    %8 = math.absf %5 : vector<8x256xf32>
    %cst = arith.constant 0.000000e+00 : f32
    %9 = vector.broadcast %cst : f32 to vector<8x256xf32>
    %10 = arith.subf %9, %8 : vector<8x256xf32>
    %11 = math.exp %10 : vector<8x256xf32>
    %cst_7 = arith.constant 0.000000e+00 : f32
    %12 = vector.broadcast %cst_7 : f32 to vector<8x256xf32>
    %13 = arith.maximumf %5, %12 : vector<8x256xf32>
    %14 = arith.mulf %5, %6 : vector<8x256xf32>
    %15 = arith.subf %13, %14 : vector<8x256xf32>
    %cst_8 = arith.constant 1.000000e+00 : f32
    %16 = vector.broadcast %cst_8 : f32 to vector<8x256xf32>
    %17 = arith.addf %16, %11 : vector<8x256xf32>
    %18 = math.log %17 : vector<8x256xf32>
    %19 = arith.addf %15, %18 : vector<8x256xf32>
    %cst_9 = arith.constant 1.000000e+00 : f32
    %20 = vector.broadcast %cst_9 : f32 to vector<8x256xf32>
    %21 = arith.addf %20, %11 : vector<8x256xf32>
    %22 = tpu.reciprocal %21 {approx = true} : vector<8x256xf32> -> vector<8x256xf32>
    %23 = arith.mulf %21, %22 : vector<8x256xf32>
    %cst_10 = arith.constant 2.000000e+00 : f32
    %24 = vector.broadcast %cst_10 : f32 to vector<8x256xf32>
    %25 = arith.subf %24, %23 : vector<8x256xf32>
    %26 = arith.mulf %22, %25 : vector<8x256xf32>
    %cst_11 = arith.constant 0.000000e+00 : f32
    %27 = vector.broadcast %cst_11 : f32 to vector<8x256xf32>
    %28 = arith.cmpf oge, %5, %27 : vector<8x256xf32>
    %29 = arith.mulf %11, %26 : vector<8x256xf32>
    %30 = arith.select %28, %26, %29 : vector<8x256xi1>, vector<8x256xf32>
    %c0_12 = arith.constant 0 : index
    %31 = memref.load %arg6[%c0_12] : memref<3xf32, #tpu.memory_space<smem>>
    %32 = vector.broadcast %7 : vector<8x1xf32> to vector<8x256xf32>
    %33 = arith.mulf %19, %32 : vector<8x256xf32>
    %34 = vector.shape_cast %33 : vector<8x256xf32> to vector<1x8x256xf32>
    %cst_13 = arith.constant dense<0.000000e+00> : vector<1xf32>
    %35 = vector.multi_reduction <add>, %34, %cst_13 [1, 2] : vector<1x8x256xf32> to vector<1xf32>
    %36 = vector.shape_cast %35 : vector<1xf32> to vector<1x1x1xf32>
    %37 = vector.extract %36[0, 0, 0] : f32 from vector<1x1x1xf32>
    %38 = arith.addf %31, %37 : f32
    %c0_14 = arith.constant 0 : index
    %39 = memref.load %arg6[%c0_14] : memref<3xf32, #tpu.memory_space<smem>>
    memref.store %38, %arg6[%c0_14] : memref<3xf32, #tpu.memory_space<smem>>
    %c1 = arith.constant 1 : index
    %40 = memref.load %arg6[%c1] : memref<3xf32, #tpu.memory_space<smem>>
    %41 = arith.mulf %30, %6 : vector<8x256xf32>
    %42 = vector.shape_cast %41 : vector<8x256xf32> to vector<1x8x256xf32>
    %cst_15 = arith.constant dense<0.000000e+00> : vector<1xf32>
    %43 = vector.multi_reduction <add>, %42, %cst_15 [1, 2] : vector<1x8x256xf32> to vector<1xf32>
    %44 = vector.shape_cast %43 : vector<1xf32> to vector<1x1x1xf32>
    %45 = vector.extract %44[0, 0, 0] : f32 from vector<1x1x1xf32>
    %46 = arith.addf %40, %45 : f32
    %c1_16 = arith.constant 1 : index
    %47 = memref.load %arg6[%c1_16] : memref<3xf32, #tpu.memory_space<smem>>
    memref.store %46, %arg6[%c1_16] : memref<3xf32, #tpu.memory_space<smem>>
    %c2 = arith.constant 2 : index
    %48 = memref.load %arg6[%c2] : memref<3xf32, #tpu.memory_space<smem>>
    %49 = vector.shape_cast %30 : vector<8x256xf32> to vector<1x8x256xf32>
    %cst_17 = arith.constant dense<0.000000e+00> : vector<1xf32>
    %50 = vector.multi_reduction <add>, %49, %cst_17 [1, 2] : vector<1x8x256xf32> to vector<1xf32>
    %51 = vector.shape_cast %50 : vector<1xf32> to vector<1x1x1xf32>
    %52 = vector.extract %51[0, 0, 0] : f32 from vector<1x1x1xf32>
    %53 = vector.shape_cast %6 : vector<8x256xf32> to vector<1x8x256xf32>
    %cst_18 = arith.constant dense<0.000000e+00> : vector<1xf32>
    %54 = vector.multi_reduction <add>, %53, %cst_18 [1, 2] : vector<1x8x256xf32> to vector<1xf32>
    %55 = vector.shape_cast %54 : vector<1xf32> to vector<1x1x1xf32>
    %56 = vector.extract %55[0, 0, 0] : f32 from vector<1x1x1xf32>
    %57 = arith.addf %52, %56 : f32
    %58 = arith.addf %48, %57 : f32
    %c2_19 = arith.constant 2 : index
    %59 = memref.load %arg6[%c2_19] : memref<3xf32, #tpu.memory_space<smem>>
    memref.store %58, %arg6[%c2_19] : memref<3xf32, #tpu.memory_space<smem>>
    %c0_i32_20 = arith.constant 0 : i32
    %60 = arith.cmpi eq, %arg0, %c0_i32_20 : i32
    %c0_i32_21 = arith.constant 0 : i32
    %61 = arith.cmpi eq, %arg1, %c0_i32_21 : i32
    %62 = arith.andi %60, %61 : i1
    %63 = arith.extui %62 : i1 to i32
    %c0_i32_22 = arith.constant 0 : i32
    %64 = arith.cmpi ne, %63, %c0_i32_22 : i32
    scf.if %64 {
      %c0_23 = arith.constant 0 : index
      %65 = memref.load %arg6[%c0_23] : memref<3xf32, #tpu.memory_space<smem>>
      %cst_24 = arith.constant 2.048000e+03 : f32
      %66 = arith.divf %65, %cst_24 : f32
      %c1_25 = arith.constant 1 : index
      %67 = memref.load %arg6[%c1_25] : memref<3xf32, #tpu.memory_space<smem>>
      %cst_26 = arith.constant 2.000000e+00 : f32
      %68 = arith.mulf %cst_26, %67 : f32
      %cst_27 = arith.constant 1.000000e-03 : f32
      %69 = arith.addf %68, %cst_27 : f32
      %c2_28 = arith.constant 2 : index
      %70 = memref.load %arg6[%c2_28] : memref<3xf32, #tpu.memory_space<smem>>
      %cst_29 = arith.constant 1.000000e-03 : f32
      %71 = arith.addf %70, %cst_29 : f32
      %72 = arith.divf %69, %71 : f32
      %c0_30 = arith.constant 0 : index
      %73 = memref.load %arg5[%c0_30] : memref<3xf32, #tpu.memory_space<smem>>
      memref.store %66, %arg5[%c0_30] : memref<3xf32, #tpu.memory_space<smem>>
      %c1_31 = arith.constant 1 : index
      %74 = memref.load %arg5[%c1_31] : memref<3xf32, #tpu.memory_space<smem>>
      memref.store %72, %arg5[%c1_31] : memref<3xf32, #tpu.memory_space<smem>>
      %cst_32 = arith.constant 1.000000e+00 : f32
      %75 = arith.mulf %cst_32, %72 : f32
      %76 = arith.subf %66, %75 : f32
      %c2_33 = arith.constant 2 : index
      %77 = memref.load %arg5[%c2_33] : memref<3xf32, #tpu.memory_space<smem>>
      memref.store %76, %arg5[%c2_33] : memref<3xf32, #tpu.memory_space<smem>>
    } else {
    }
    return
  }
  func.func @transform_0(%arg0: i32, %arg1: i32) -> (i32, i32) {
    %c0_i32 = arith.constant 0 : i32
    return %arg0, %arg1 : i32, i32
  }
  func.func @transform_1(%arg0: i32, %arg1: i32) -> (i32, i32) {
    %c0_i32 = arith.constant 0 : i32
    return %arg0, %arg1 : i32, i32
  }
  func.func @transform_2(%arg0: i32, %arg1: i32) -> (i32, i32) {
    %c0_i32 = arith.constant 0 : i32
    %c0_i32_0 = arith.constant 0 : i32
    return %arg0, %c0_i32 : i32, i32
  }
  func.func @transform_3(%arg0: i32, %arg1: i32) -> i32 {
    %c0_i32 = arith.constant 0 : i32
    %c0_i32_0 = arith.constant 0 : i32
    return %c0_i32 : i32
  }
}

</mosaic_0001>

<bundles_post_ra>
// kernel: tpu_custom_call.1
= control target key start
LH: loop header
LB: loop body
LE: loop exit
PB: predicated region body
PF: predicated region fallthrough
CT: control target
= control target key end

     0   :  { %8 = vsyncpa [#allocation4], 0  ;;  %s347_s0 = inlined_call_operand.hbm [shape: f32[8,256], index: 0, kind: input, shape index: {}]   ;;  %s348_s1 = inlined_call_operand.hbm [shape: f32[8,256], index: 1, kind: input, shape index: {}]   ;;  %s349_s2 = inlined_call_operand.vmem [shape: f32[8,1], index: 2, kind: input, shape index: {}]   ;;  %s350_s3 = inlined_call_operand.hbm [shape: f32[3], index: 3, kind: output, shape index: {}]  }
   0x1   :  { %9 = vsyncpa [#allocation7], 0 }
   0x2   :  { %10 = vsyncpa [#allocation5], 0  ;;  %s284_s12 = smov [#allocation3]   ;;  %s285_s14 = smov [#allocation6]  }
   0x3   :  { %s17_s13 = sshll.u32 %s284_s12, 4  ;;  %s27_s15 = sshll.u32 %s285_s14, 4  ;;  %s18_s13 = int_to_ptr.vmem [resolvable:$true] %s17_s13  ;;  %s28_s15 = int_to_ptr.vmem [resolvable:$true] %s27_s15 }
   0x4   :  { %s224_s18 = scalar_lea.hbm %s347_s0, 256 }
   0x5   :  { %p225_p0 = scmp.ne.s32.totalorder %s347_s0, %s224_s18  ;;  %p228_p1 = scmp.lt.u32.totalorder %s224_s18, %s347_s0 }
   0x7   :  { %p230_p2 = pnand %p228_p1, %p225_p0 }
   0x9   :  { %233 = shalt.err (!%p230_p2)
}
   0xa   :  { %s234_s23 = scalar_lea.vmem %s18_s13, 256  ;;  %p239_p4 = scmp.lt.s32.totalorder %s18_s13, %s18_s13 }
   0xb   :  { %p235_p3 = scmp.ne.s32.totalorder %s18_s13, %s234_s23  ;;  %p240_p5 = scmp.lt.s32.totalorder %s234_s23, %s234_s23 }
   0xd   :  { %p241_p6 = por %p240_p5, %p239_p4 }
   0xf   :  { %p242_p7 = pnand %p241_p6, %p235_p3 }
  0x11   :  { %245 = shalt.err (!%p242_p7)
}
  0x12   :  { %20 = dma.hbm_to_vmem [thread:$0]  %s347_s0, 256, %s18_s13, [#allocation4]  }
  0x13   :  { %s246_s28 = scalar_lea.hbm %s348_s1, 256 }
  0x14   :  { %p247_p8 = scmp.ne.s32.totalorder %s348_s1, %s246_s28  ;;  %p250_p9 = scmp.lt.u32.totalorder %s246_s28, %s348_s1 }
  0x16   :  { %p252_p10 = pnand %p250_p9, %p247_p8 }
  0x18   :  { %255 = shalt.err (!%p252_p10)
}
  0x19   :  { %s256_s6 = scalar_lea.vmem %s28_s15, 256  ;;  %p261_p12 = scmp.lt.s32.totalorder %s28_s15, %s28_s15 }
  0x1a   :  { %p257_p11 = scmp.ne.s32.totalorder %s28_s15, %s256_s6  ;;  %p262_p13 = scmp.lt.s32.totalorder %s256_s6, %s256_s6 }
  0x1c   :  { %p263_p0 = por %p262_p13, %p261_p12 }
  0x1e   :  { %p264_p1 = pnand %p263_p0, %p257_p11 }
  0x20   :  { %267 = shalt.err (!%p264_p1)
}
  0x21   :  { %30 = dma.hbm_to_vmem [thread:$0]  %s348_s1, 256, %s28_s15, [#allocation7]  }
  0x22   :  { %278 = dma.done.wait [#allocation4], 256  }
  0x23   :  { %279 = vsyncadd [#allocation4], 4294967040 }
  0x24   :  { %280 = dma.done.wait [#allocation7], 256  }
  0x25   :  { %281 = vsyncadd [#allocation7], 4294967040  ;;  %v286_v0 = vmov 0   ;;  %v55_v1 = vld [vmem:[%s349_s2] sm:$0xff]  ;;  %v52_v3 = vld [vmem:[#allocation3 + $0x8] sm:$0xff]  ;;  %s268_s22 = scalar_lea.hbm %s350_s3, 16 }
  0x26   :  { %209 = vset.pattern.permute.xlu0 %v286_v0  ;;  %v51_v2 = vld [vmem:[#allocation3] sm:$0xff]  ;;  %v53_v4 = vld [vmem:[#allocation6] sm:$0xff]  ;;  %v54_v5 = vld [vmem:[#allocation6 + $0x8] sm:$0xff]  ;;  %v57_v7 = vand.u32 2147483647, %v52_v3  ;;  %v65_v13 = vmax.f32 %v52_v3, 0.0  ;;  %p269_p2 = scmp.ne.s32.totalorder %s350_s3, %s268_s22  ;;  %p272_p3 = scmp.lt.u32.totalorder %s268_s22, %s350_s3 }
  0x27   :  { %95 = vperm.xlu0 %209, %v55_v1   ;;  %v56_v6 = vand.u32 2147483647, %v51_v2  ;;  %v66_v8 = vmul.f32 %v53_v4, %v51_v2  ;;  %v67_v9 = vmul.f32 %v54_v5, %v52_v3  ;;  %v64_v12 = vmax.f32 %v51_v2, 0.0 }
  0x28   :  { %v59_v11 = vsub.f32 0.0, %v57_v7  ;;  %vm86_vm0 = vcmp.ge.f32.partialorder %v51_v2, 0.0  ;;  %vm87_vm1 = vcmp.ge.f32.partialorder %v52_v3, 0.0  ;;  %v140_v44 = vadd.f32 %v54_v5, %v53_v4  ;;  %p274_p4 = pnand %p272_p3, %p269_p2 }
  0x29   :  { %v58_v10 = vsub.f32 0.0, %v56_v6  ;;  %v68_v16 = vsub.f32 %v64_v12, %v66_v8  ;;  %v69_v17 = vsub.f32 %v65_v13, %v67_v9 }
  0x2a   :  { %v62_v15 = vmul.f32 1.442695, %v59_v11 }
  0x2b   :  { %v60_v14 = vmul.f32 1.442695, %v58_v10 }
  0x2d   :  { %210 = vpow2.f32 %v60_v14 }
  0x2e   :  { %212 = vpow2.f32 %v62_v15 }
  0x37   :  { %v211_v18 = vpop.eup %210 }
  0x38   :  { %v213_v19 = vpop.eup %212  ;;  %v70_v20 = vadd.f32 1.0, %v211_v18 }
  0x39   :  { %v71_v21 = vadd.f32 1.0, %v213_v19 }
  0x3a   :  { %214 = vrcp.f32 %v70_v20 }
  0x3b   :  { %216 = vrcp.f32 %v71_v21 }
  0x3c   :  { %218 = vlog2.f32 %v70_v20 }
  0x3d   :  { %220 = vlog2.f32 %v71_v21 }
  0x44   :  { %v215_v22 = vpop.eup %214 }
  0x45   :  { %v217_v23 = vpop.eup %216  ;;  %v80_v24 = vmul.f32 %v215_v22, %v70_v20 }
  0x46   :  { %v219_v25 = vpop.eup %218  ;;  %v81_v26 = vmul.f32 %v217_v23, %v71_v21 }
  0x47   :  { %v221_v27 = vpop.eup %220  ;;  %v82_v28 = vsub.f32 2.0, %v80_v24  ;;  %v73_v29 = vmul.f32 0.6931472, %v219_v25 }
  0x48   :  { %v83_v30 = vsub.f32 2.0, %v81_v26  ;;  %v75_v31 = vmul.f32 0.6931472, %v221_v27 }
  0x49   :  { %v84_v32 = vmul.f32 %v215_v22, %v82_v28  ;;  %v76_v33 = vadd.f32 %v73_v29, %v68_v16 }
  0x4a   :  { %v85_v34 = vmul.f32 %v217_v23, %v83_v30  ;;  %v77_v35 = vadd.f32 %v75_v31, %v69_v17 }
  0x4b   :  { %v88_v36 = vmul.f32 %v211_v18, %v84_v32 }
  0x4c   :  { %v89_v37 = vmul.f32 %v213_v19, %v85_v34 }
  0x4d   :  { %v90_v38 = vsel %vm86_vm0, %v84_v32, %v88_v36 }
  0x4e   :  { %v91_v39 = vsel %vm87_vm1, %v85_v34, %v89_v37  ;;  %v114_v40 = vmul.f32 %v90_v38, %v53_v4 }
  0x4f   :  { %v115_v41 = vmul.f32 %v91_v39, %v54_v5  ;;  %v130_v43 = vadd.f32 %v91_v39, %v90_v38 }
  0x51   :  { %v116_v42 = vadd.f32 %v115_v41, %v114_v40 }
  0x53   :  { %117 = vadd.xlane.f32.xlu1 %v116_v42 }
  0x57   :  { %131 = vadd.xlane.f32.xlu1 %v130_v43 }
  0x5b   :  { %141 = vadd.xlane.f32.xlu1 %v140_v44 }
  0xa6   :  { %v96_v45 = vpop.permute.xlu0 %95 }
  0xa7   :  { %v98_v46 = vmul.f32 %v96_v45, %v76_v33  ;;  %v99_v47 = vmul.f32 %v96_v45, %v77_v35 }
  0xa9   :  { %v100_v48 = vadd.f32 %v99_v47, %v98_v46 }
  0xab   :  { %101 = vadd.xlane.f32.xlu0 %v100_v48 }
  0xe0   :  { %v118_v49 = vpop.xlane.xlu1 %117 }
  0xe1   :  { %v119_v52 = vrot.slane %v118_v49, 4 }
  0xe3   :  { %v120_v55 = vadd.f32 %v119_v52, %v118_v49 }
  0xe4   :  { %v132_v50 = vpop.xlane.xlu1 %131 }
  0xe5   :  { %v133_v53 = vrot.slane %v132_v50, 4  ;;  %v121_v58 = vrot.slane %v120_v55, 2 }
  0xe7   :  { %v134_v56 = vadd.f32 %v133_v53, %v132_v50  ;;  %v122_v0 = vadd.f32 %v121_v58, %v120_v55 }
  0xe8   :  { %v142_v51 = vpop.xlane.xlu1 %141 }
  0xe9   :  { %v143_v54 = vrot.slane %v142_v51, 4  ;;  %v135_v60 = vrot.slane %v134_v56, 2  ;;  %v123_v5 = vrot.slane %v122_v0, 1 }
  0xeb   :  { %v144_v57 = vadd.f32 %v143_v54, %v142_v51  ;;  %v136_v2 = vadd.f32 %v135_v60, %v134_v56  ;;  %v124_v10 = vadd.f32 %v123_v5, %v122_v0 }
  0xed   :  { %v145_v62 = vrot.slane %v144_v57, 2  ;;  %v137_v7 = vrot.slane %v136_v2, 1 }
  0xef   :  { %v146_v3 = vadd.f32 %v145_v62, %v144_v57  ;;  %v138_v11 = vadd.f32 %v137_v7, %v136_v2 }
  0xf1   :  { %v147_v8 = vrot.slane %v146_v3, 1 }
  0xf3   :  { %v148_v12 = vadd.f32 %v147_v8, %v146_v3 }
 0x138   :  { %v102_v59 = vpop.xlane.xlu0 %101 }
 0x139   :  { %v103_v61 = vrot.slane %v102_v59, 4 }
 0x13b   :  { %v104_v63 = vadd.f32 %v103_v61, %v102_v59 }
 0x13d   :  { %v105_v1 = vrot.slane %v104_v63, 2 }
 0x13f   :  { %v106_v4 = vadd.f32 %v105_v1, %v104_v63 }
 0x141   :  { %v107_v6 = vrot.slane %v106_v4, 1 }
 0x143   :  { %v108_v9 = vadd.f32 %v107_v6, %v106_v4 }
 0x145   :  { %195 = vpush %v108_v9 }
 0x146   :  { %197 = vpush %v124_v10 }
 0x147   :  { %199 = vpush %v138_v11 }
 0x148   :  { %201 = vpush %v148_v12 }
 0x176   :  { %s196_s1 = spop %195 }
 0x177   :  { %s159_s2 = smul.f32 0.00048828125, %s196_s1  ;;  %s198_s10 = spop %197 }
 0x178   :  { %s200_s11 = spop %199  ;;  %s161_s15 = smul.f32 2.0, %s198_s10 }
 0x179   :  { %170 = sst [smem:[#allocation8]] %s159_s2  ;;  %s202_s12 = spop %201 }
 0x17a   :  { %s150_s13 = sadd.f32 %s202_s12, %s200_s11 }
 0x17b   :  { %s162_s16 = sadd.f32 0.001, %s161_s15 }
 0x17c   :  { %s164_s14 = sadd.f32 0.001, %s150_s13 }
 0x17e   :  { %v165_v13 = vstv %s164_s14 }
 0x17f   :  { %222 = vrcp.f32 %v165_v13 }
 0x189   :  { %v223_v14 = vpop.eup %222 }
 0x18a   :  { %203 = vpush %v223_v14 }
 0x1bb   :  { %s204_s17 = spop %203 }
 0x1bc   :  { %s168_s18 = smul.f32 %s204_s17, %s162_s16 }
 0x1be   :  { %172 = sst [smem:[#allocation8 + $0x1]] %s168_s18 }
 0x1bf   :  { %s173_s19 = ssub.f32 %s159_s2, %s168_s18 }
 0x1c1   :  { %175 = sst [smem:[#allocation8 + $0x2]] %s173_s19 }
 0x1c2   :  { %277 = shalt.err (!%p274_p4)
}
 0x1c3   :  { %s287_s27 = smov [#allocation8]  }
 0x1c4   :  { %183 = dma.smem_to_hbm %s287_s27, 16, %s350_s3, [#allocation5]  }
 0x1c5   :  { %282 = dma.done.wait [#allocation5], 16  }
 0x1c6   :  { %283 = vsyncadd [#allocation5], 4294967280 }
 0x1c7   :  { %187 = sfence }
 0x1c8   :  { %188 = vsyncpa [#allocation4], 1 }
 0x1c9   :  { %189 = vsyncpa [#allocation7], 1 }
 0x1ca   :  { %190 = vsyncpa [#allocation5], 1 }

</bundles_post_ra>
